<compile_context>
chip_gen: v7x
topology: tpu7x:2x2x1
jax: 0.10.0
libtpu: 0.0.40
codegen_flags: <defaults>
</compile_context>

<pallas_src>
import functools
import math

import jax
import jax.numpy as jnp
from jax.experimental import pallas as pl
from jax.experimental.pallas import tpu as pltpu

LANE = 128
H1 = 256          # fc1 width (already lane-aligned)
H2 = 64           # fc2 logical width
H2_PAD = 128      # fc2 padded width (padded units exact: zero bias, ReLU(0)=0, zero w3 rows)


def _round_up(x, m):
    return (x + m - 1) // m * m


def _dqn_kernel(obs_dim, action_dim,
                obs_ref, w1_ref, b1_ref, w2_ref, b2_ref, w3_ref, b3_ref,
                out_ref, xpad_ref):
    # Stage the (TB, obs_dim) tile into a zero-padded, lane-aligned bf16 VMEM buffer so the
    # first matmul is fully (8,128)-aligned on the MXU. The scratch is re-zeroed every grid
    # step on purpose: scratch is per-core, so a program_id==0-only init would be wrong
    # under megacore "parallel" sharding of the batch axis.
    xpad_ref[...] = jnp.zeros_like(xpad_ref)
    xpad_ref[:, :obs_dim] = obs_ref[...].astype(jnp.bfloat16)
    x = xpad_ref[...]

    # fc1 + ReLU: bf16 into the MXU, f32 accumulate, bf16 bias/ReLU epilogue.
    h1 = jnp.dot(x, w1_ref[...], preferred_element_type=jnp.float32)
    h1 = jnp.maximum(h1.astype(jnp.bfloat16) + b1_ref[...], 0)
    # fc2 + ReLU
    h2 = jnp.dot(h1, w2_ref[...], preferred_element_type=jnp.float32)
    h2 = jnp.maximum(h2.astype(jnp.bfloat16) + b2_ref[...], 0)
    # fc3 (full-width MXU), then slice to the real action_dim so the HBM writeback is narrow.
    q = jnp.dot(h2, w3_ref[...], preferred_element_type=jnp.float32) + b3_ref[...]
    out_ref[...] = q[:, :action_dim].astype(out_ref.dtype)
    # TODO(synk): for acting (tiny batches), fuse greedy argmax into this epilogue so the
    # kernel emits (TB, 1) int32 actions instead of Q-values.


def dqn_forward(obs, params, *, action_dim, block_b=1024):
    """obs: (B, obs_dim) float32 or bfloat16. Returns (B, action_dim) float32 Q-values."""
    B, obs_dim = obs.shape
    obs_pad, h1_w = params["w1"].shape
    h2_pad, out_pad = params["w3"].shape
    assert obs_dim <= obs_pad and action_dim <= out_pad

    # Ceil-balanced batch tiles (padding <= a few rows), and at least 2 / an even number of
    # tiles whenever the batch allows, so the "parallel" axis feeds both v7x TensorCores.
    n_tiles = max(1, -(-B // block_b))
    if n_tiles == 1 and B >= 16:
        n_tiles = 2
    if n_tiles > 1 and n_tiles % 2:
        n_tiles += 1
    TB = _round_up(-(-B // n_tiles), 8)
    Bp = n_tiles * TB

    if Bp != B:
        obs = jnp.pad(obs, ((0, Bp - B), (0, 0)))   # at most ~8*n_tiles zero rows

    flops = 2 * Bp * (obs_pad * h1_w + h1_w * h2_pad + h2_pad * out_pad)
    bytes_accessed = int(
        Bp * obs_dim * obs.dtype.itemsize          # natural-width obs stream
        + Bp * action_dim * 4                      # natural-width Q writeback
        + sum(int(v.size) * v.dtype.itemsize for v in params.values())
    )

    kernel = functools.partial(_dqn_kernel, obs_dim, action_dim)

    out = pl.pallas_call(
        kernel,
        out_shape=jax.ShapeDtypeStruct((Bp, action_dim), jnp.float32),
        grid=(n_tiles,),
        in_specs=[
            pl.BlockSpec((TB, obs_dim), lambda i: (i, 0)),       # obs: streamed, natural width
            pl.BlockSpec((obs_pad, h1_w), lambda i: (0, 0)),     # w1: VMEM-resident
            pl.BlockSpec((1, h1_w), lambda i: (0, 0)),           # b1
            pl.BlockSpec((h1_w, h2_pad), lambda i: (0, 0)),      # w2
            pl.BlockSpec((1, h2_pad), lambda i: (0, 0)),         # b2
            pl.BlockSpec((h2_pad, out_pad), lambda i: (0, 0)),   # w3
            pl.BlockSpec((1, out_pad), lambda i: (0, 0)),        # b3
        ],
        out_specs=pl.BlockSpec((TB, action_dim), lambda i: (i, 0)),  # natural-width Q out
        scratch_shapes=[pltpu.VMEM((TB, obs_pad), jnp.bfloat16)],    # in-kernel obs pad buffer
        compiler_params=pltpu.CompilerParams(
            dimension_semantics=("parallel",),       # batch tiles shard across v7x's 2 TCs
            vmem_limit_bytes=32 * 1024 * 1024,       # safe on v7x's 64 MiB/TC VMEM
        ),
        cost_estimate=pl.CostEstimate(
            flops=flops, transcendentals=0, bytes_accessed=bytes_accessed),
    )(obs, params["w1"], params["b1"], params["w2"], params["b2"],
      params["w3"], params["b3"])

    return out if Bp == B else out[:B]


def init_dqn_params(key, obs_dim, action_dim):
    """Matches the PyTorch module's init; weights stored transposed (in, out), zero-padded to
    lane-aligned shapes, bf16 weights / bf16 hidden biases / f32 final bias."""
    obs_pad = _round_up(max(obs_dim, 1), LANE)
    out_pad = _round_up(max(action_dim, 1), LANE)
    k = jax.random.split(key, 6)

    def xavier_normal(key, fan_in, fan_out):
        std = math.sqrt(2.0 / (fan_in + fan_out))
        return std * jax.random.normal(key, (fan_in, fan_out), dtype=jnp.float32)

    def bias_init(key, fan_in, fan_out):
        bound = 1.0 / math.sqrt(fan_in)
        return jax.random.uniform(key, (1, fan_out), dtype=jnp.float32,
                                  minval=-bound, maxval=bound)

    w1 = jnp.zeros((obs_pad, H1), jnp.float32).at[:obs_dim, :].set(
        xavier_normal(k[0], obs_dim, H1))
    b1 = bias_init(k[1], obs_dim, H1)

    w2 = jnp.zeros((H1, H2_PAD), jnp.float32).at[:, :H2].set(
        xavier_normal(k[2], H1, H2))
    b2 = jnp.zeros((1, H2_PAD), jnp.float32).at[:, :H2].set(
        bias_init(k[3], H1, H2))

    w3 = jnp.zeros((H2_PAD, out_pad), jnp.float32).at[:H2, :action_dim].set(
        jax.random.uniform(k[4], (H2, action_dim), dtype=jnp.float32,
                           minval=-0.002, maxval=0.002))
    b3 = jnp.zeros((1, out_pad), jnp.float32).at[:, :action_dim].set(
        bias_init(k[5], H2, action_dim))

    return {
        "w1": w1.astype(jnp.bfloat16), "b1": b1.astype(jnp.bfloat16),
        "w2": w2.astype(jnp.bfloat16), "b2": b2.astype(jnp.bfloat16),
        "w3": w3.astype(jnp.bfloat16), "b3": b3,   # final bias stays f32
    }


def dqn_reference(obs, params, *, action_dim):
    """Pure-JAX reference with identical bf16-matmul / f32-accumulate / bf16-epilogue math."""
    B, obs_dim = obs.shape
    obs_pad = params["w1"].shape[0]
    x = jnp.zeros((B, obs_pad), jnp.bfloat16).at[:, :obs_dim].set(
        obs.astype(jnp.bfloat16))
    h1 = jnp.maximum(
        jnp.dot(x, params["w1"], preferred_element_type=jnp.float32)
        .astype(jnp.bfloat16) + params["b1"], 0)
    h2 = jnp.maximum(
        jnp.dot(h1, params["w2"], preferred_element_type=jnp.float32)
        .astype(jnp.bfloat16) + params["b2"], 0)
    q = jnp.dot(h2, params["w3"], preferred_element_type=jnp.float32) + params["b3"]
    return q[:, :action_dim]


if __name__ == "__main__":
    key = jax.random.PRNGKey(0)
    k_param, k_obs1, k_obs2 = jax.random.split(key, 3)

    obs_dim = 4      # e.g. CartPole observation dim
    action_dim = 2   # e.g. CartPole action dim
    params = init_dqn_params(k_param, obs_dim, action_dim)

    # Case 1: tiny inference batch (single tile).
    obs = jax.random.normal(k_obs1, (8, obs_dim), dtype=jnp.float32)
    out = jax.block_until_ready(dqn_forward(obs, params, action_dim=action_dim))
    ref = dqn_reference(obs, params, action_dim=action_dim)
    assert out.shape == (8, action_dim)
    assert jnp.allclose(out, ref, atol=1e-3, rtol=1e-3), (
        f"max abs diff {jnp.max(jnp.abs(out - ref))}")

    # Case 2: non-divisible batch with a small block_b to exercise multi-tile grid,
    # ceil-balanced tiling and batch-row padding/slicing.
    obs2 = jax.random.normal(k_obs2, (40, obs_dim), dtype=jnp.float32)
    out2 = jax.block_until_ready(
        dqn_forward(obs2, params, action_dim=action_dim, block_b=16))
    ref2 = dqn_reference(obs2, params, action_dim=action_dim)
    assert out2.shape == (40, action_dim)
    assert jnp.allclose(out2, ref2, atol=1e-3, rtol=1e-3), (
        f"max abs diff {jnp.max(jnp.abs(out2 - ref2))}")

    print("KERNEL_OK")
</pallas_src>

<mosaic_0001>
module attributes {stable_mosaic.version = 11 : i64} {
  func.func @_dqn_kernel(%arg0: i32, %arg1: memref<8x4xf32, #tpu.memory_space<vmem>>, %arg2: memref<128x256xbf16, #tpu.memory_space<vmem>>, %arg3: memref<1x256xbf16, #tpu.memory_space<vmem>>, %arg4: memref<256x128xbf16, #tpu.memory_space<vmem>>, %arg5: memref<1x128xbf16, #tpu.memory_space<vmem>>, %arg6: memref<128x128xbf16, #tpu.memory_space<vmem>>, %arg7: memref<1x128xf32, #tpu.memory_space<vmem>>, %arg8: memref<8x2xf32, #tpu.memory_space<vmem>>, %arg9: memref<8x128xbf16, #tpu.memory_space<vmem>>) attributes {dimension_semantics = [#tpu.dimension_semantics<parallel>], iteration_bounds = array<i64: 1>, scalar_prefetch = 0 : i64, scratch_operands = 1 : i64, tpu.core_type = #tpu.core_type<tc>, window_params = [{transform_indices = @transform_0, window_bounds = array<i64: 8, 4>}, {pipeline_mode = #tpu.pipeline_mode<synchronous>, transform_indices = @transform_1, window_bounds = array<i64: 128, 256>}, {pipeline_mode = #tpu.pipeline_mode<synchronous>, transform_indices = @transform_2, window_bounds = array<i64: 1, 256>}, {pipeline_mode = #tpu.pipeline_mode<synchronous>, transform_indices = @transform_3, window_bounds = array<i64: 256, 128>}, {pipeline_mode = #tpu.pipeline_mode<synchronous>, transform_indices = @transform_4, window_bounds = array<i64: 1, 128>}, {pipeline_mode = #tpu.pipeline_mode<synchronous>, transform_indices = @transform_5, window_bounds = array<i64: 128, 128>}, {pipeline_mode = #tpu.pipeline_mode<synchronous>, transform_indices = @transform_6, window_bounds = array<i64: 1, 128>}, {transform_indices = @transform_7, window_bounds = array<i64: 8, 2>}]} {
    %cst = arith.constant 0.000000e+00 : bf16
    %0 = vector.broadcast %cst : bf16 to vector<8x128xbf16>
    %c0 = arith.constant 0 : index
    %c0_0 = arith.constant 0 : index
    %1 = vector.load %arg9[%c0, %c0_0] : memref<8x128xbf16, #tpu.memory_space<vmem>>, vector<8x128xbf16>
    tpu.vector_store %arg9[%c0, %c0_0], %0 {strides = array<i32>} : memref<8x128xbf16, #tpu.memory_space<vmem>>, vector<8x128xbf16>,
    %c0_1 = arith.constant 0 : index
    %c0_2 = arith.constant 0 : index
    %2 = vector.load %arg1[%c0_1, %c0_2] : memref<8x4xf32, #tpu.memory_space<vmem>>, vector<8x4xf32>
    %3 = arith.truncf %2 : vector<8x4xf32> to vector<8x4xbf16>
    %c0_3 = arith.constant 0 : index
    %c0_4 = arith.constant 0 : index
    %4 = vector.load %arg9[%c0_3, %c0_4] : memref<8x128xbf16, #tpu.memory_space<vmem>>, vector<8x4xbf16>
    tpu.vector_store %arg9[%c0_3, %c0_4], %3 {strides = array<i32>} : memref<8x128xbf16, #tpu.memory_space<vmem>>, vector<8x4xbf16>,
    %c0_5 = arith.constant 0 : index
    %c0_6 = arith.constant 0 : index
    %5 = vector.load %arg9[%c0_5, %c0_6] : memref<8x128xbf16, #tpu.memory_space<vmem>>, vector<8x128xbf16>
    %c0_7 = arith.constant 0 : index
    %c0_8 = arith.constant 0 : index
    %6 = vector.load %arg2[%c0_7, %c0_8] : memref<128x256xbf16, #tpu.memory_space<vmem>>, vector<128x256xbf16>
    %cst_9 = arith.constant dense<0.000000e+00> : vector<8x256xf32>
    %7 = tpu.matmul %5, %6, %cst_9 {dimension_numbers = #tpu.dot_dimension_numbers<[1], [0], [0], [1], [0, 0, 1, 1], [], []>} : vector<8x128xbf16>, vector<128x256xbf16>, vector<8x256xf32> -> vector<8x256xf32>
    %8 = arith.truncf %7 : vector<8x256xf32> to vector<8x256xbf16>
    %c0_10 = arith.constant 0 : index
    %c0_11 = arith.constant 0 : index
    %9 = vector.load %arg3[%c0_10, %c0_11] : memref<1x256xbf16, #tpu.memory_space<vmem>>, vector<1x256xbf16>
    %10 = vector.broadcast %9 : vector<1x256xbf16> to vector<8x256xbf16>
    %11 = arith.addf %8, %10 : vector<8x256xbf16>
    %cst_12 = arith.constant 0.000000e+00 : bf16
    %12 = vector.broadcast %cst_12 : bf16 to vector<8x256xbf16>
    %13 = arith.maximumf %11, %12 : vector<8x256xbf16>
    %c0_13 = arith.constant 0 : index
    %c0_14 = arith.constant 0 : index
    %14 = vector.load %arg4[%c0_13, %c0_14] : memref<256x128xbf16, #tpu.memory_space<vmem>>, vector<256x128xbf16>
    %cst_15 = arith.constant dense<0.000000e+00> : vector<8x128xf32>
    %15 = tpu.matmul %13, %14, %cst_15 {dimension_numbers = #tpu.dot_dimension_numbers<[1], [0], [0], [1], [0, 0, 1, 1], [], []>} : vector<8x256xbf16>, vector<256x128xbf16>, vector<8x128xf32> -> vector<8x128xf32>
    %16 = arith.truncf %15 : vector<8x128xf32> to vector<8x128xbf16>
    %c0_16 = arith.constant 0 : index
    %c0_17 = arith.constant 0 : index
    %17 = vector.load %arg5[%c0_16, %c0_17] : memref<1x128xbf16, #tpu.memory_space<vmem>>, vector<1x128xbf16>
    %18 = vector.broadcast %17 : vector<1x128xbf16> to vector<8x128xbf16>
    %19 = arith.addf %16, %18 : vector<8x128xbf16>
    %cst_18 = arith.constant 0.000000e+00 : bf16
    %20 = vector.broadcast %cst_18 : bf16 to vector<8x128xbf16>
    %21 = arith.maximumf %19, %20 : vector<8x128xbf16>
    %c0_19 = arith.constant 0 : index
    %c0_20 = arith.constant 0 : index
    %22 = vector.load %arg6[%c0_19, %c0_20] : memref<128x128xbf16, #tpu.memory_space<vmem>>, vector<128x128xbf16>
    %cst_21 = arith.constant dense<0.000000e+00> : vector<8x128xf32>
    %23 = tpu.matmul %21, %22, %cst_21 {dimension_numbers = #tpu.dot_dimension_numbers<[1], [0], [0], [1], [0, 0, 1, 1], [], []>} : vector<8x128xbf16>, vector<128x128xbf16>, vector<8x128xf32> -> vector<8x128xf32>
    %c0_22 = arith.constant 0 : index
    %c0_23 = arith.constant 0 : index
    %24 = vector.load %arg7[%c0_22, %c0_23] : memref<1x128xf32, #tpu.memory_space<vmem>>, vector<1x128xf32>
    %25 = vector.broadcast %24 : vector<1x128xf32> to vector<8x128xf32>
    %26 = arith.addf %23, %25 : vector<8x128xf32>
    %27 = vector.extract_strided_slice %26 {offsets = [0, 0], sizes = [8, 2], strides = [1, 1]} : vector<8x128xf32> to vector<8x2xf32>
    %c0_24 = arith.constant 0 : index
    %c0_25 = arith.constant 0 : index
    %28 = vector.load %arg8[%c0_24, %c0_25] : memref<8x2xf32, #tpu.memory_space<vmem>>, vector<8x2xf32>
    tpu.vector_store %arg8[%c0_24, %c0_25], %27 {strides = array<i32>} : memref<8x2xf32, #tpu.memory_space<vmem>>, vector<8x2xf32>,
    return
  }
  func.func @transform_0(%arg0: i32) -> (i32, i32) {
    %c0_i32 = arith.constant 0 : i32
    %c0_i32_0 = arith.constant 0 : i32
    return %arg0, %c0_i32 : i32, i32
  }
  func.func @transform_1(%arg0: i32) -> (i32, i32) {
    %c0_i32 = arith.constant 0 : i32
    %c0_i32_0 = arith.constant 0 : i32
    %c0_i32_1 = arith.constant 0 : i32
    return %c0_i32, %c0_i32_0 : i32, i32
  }
  func.func @transform_2(%arg0: i32) -> (i32, i32) {
    %c0_i32 = arith.constant 0 : i32
    %c0_i32_0 = arith.constant 0 : i32
    %c0_i32_1 = arith.constant 0 : i32
    return %c0_i32, %c0_i32_0 : i32, i32
  }
  func.func @transform_3(%arg0: i32) -> (i32, i32) {
    %c0_i32 = arith.constant 0 : i32
    %c0_i32_0 = arith.constant 0 : i32
    %c0_i32_1 = arith.constant 0 : i32
    return %c0_i32, %c0_i32_0 : i32, i32
  }
  func.func @transform_4(%arg0: i32) -> (i32, i32) {
    %c0_i32 = arith.constant 0 : i32
    %c0_i32_0 = arith.constant 0 : i32
    %c0_i32_1 = arith.constant 0 : i32
    return %c0_i32, %c0_i32_0 : i32, i32
  }
  func.func @transform_5(%arg0: i32) -> (i32, i32) {
    %c0_i32 = arith.constant 0 : i32
    %c0_i32_0 = arith.constant 0 : i32
    %c0_i32_1 = arith.constant 0 : i32
    return %c0_i32, %c0_i32_0 : i32, i32
  }
  func.func @transform_6(%arg0: i32) -> (i32, i32) {
    %c0_i32 = arith.constant 0 : i32
    %c0_i32_0 = arith.constant 0 : i32
    %c0_i32_1 = arith.constant 0 : i32
    return %c0_i32, %c0_i32_0 : i32, i32
  }
  func.func @transform_7(%arg0: i32) -> (i32, i32) {
    %c0_i32 = arith.constant 0 : i32
    %c0_i32_0 = arith.constant 0 : i32
    return %arg0, %c0_i32 : i32, i32
  }
}

</mosaic_0001>

<bundles_post_ra>
// kernel: tpu_custom_call.1
= control target key start
LH: loop header
LB: loop body
LE: loop exit
PB: predicated region body
PF: predicated region fallthrough
CT: control target
= control target key end

     0   :  { %12 = vsyncpa [#allocation4], 0  ;;  %s888_s0 = inlined_call_operand.vmem [shape: f32[8,4], index: 0, kind: input, shape index: {}]   ;;  %s889_s1 = inlined_call_operand.hbm [shape: bf16[128,256], index: 1, kind: input, shape index: {}]   ;;  %s890_s2 = inlined_call_operand.vmem [shape: bf16[1,256], index: 2, kind: input, shape index: {}]   ;;  %s891_s3 = inlined_call_operand.hbm [shape: bf16[256,128], index: 3, kind: input, shape index: {}]   ;;  %s892_s4 = inlined_call_operand.vmem [shape: bf16[1,128], index: 4, kind: input, shape index: {}]   ;;  %s893_s5 = inlined_call_operand.hbm [shape: bf16[128,128], index: 5, kind: input, shape index: {}]   ;;  %s894_s6 = inlined_call_operand.vmem [shape: f32[1,128], index: 6, kind: input, shape index: {}]   ;;  %s895_s7 = inlined_call_operand.vmem [shape: f32[8,2], index: 7, kind: output, shape index: {}]  }
   0x1   :  { %13 = vsyncpa [#allocation6], 0  ;;  %s775_s24 = smov [#allocation5]   ;;  %s705_s28 = scalar_lea.hbm %s891_s3, 2048 }
   0x2   :  { %s35_s25 = sshll.u32 %s775_s24, 4  ;;  %p706_p0 = scmp.ne.s32.totalorder %s891_s3, %s705_s28  ;;  %s36_s25 = int_to_ptr.vmem [resolvable:$true] %s35_s25 }
   0x3   :  { %p709_p1 = scmp.lt.u32.totalorder %s705_s28, %s891_s3 }
   0x5   :  { %p711_p2 = pnand %p709_p1, %p706_p0 }
   0x7   :  { %714 = shalt.err (!%p711_p2)
}
   0x8   :  { %s715_s10 = scalar_lea.vmem %s36_s25, 2048  ;;  %p720_p4 = scmp.lt.s32.totalorder %s36_s25, %s36_s25 }
   0x9   :  { %p716_p3 = scmp.ne.s32.totalorder %s36_s25, %s715_s10  ;;  %p721_p5 = scmp.lt.s32.totalorder %s715_s10, %s715_s10 }
   0xb   :  { %p722_p6 = por %p721_p5, %p720_p4 }
   0xd   :  { %p723_p7 = pnand %p722_p6, %p716_p3 }
   0xf   :  { %726 = shalt.err (!%p723_p7)
}
  0x10   :  { %s776_s11 = smov 64   ;;  %s777_s12 = smov 4  }
  0x11   :  { %41 = dma.hbm_to_vmem [thread:$0]  %s891_s3, 2048, %s36_s25, [#allocation6], %s776_s11, %s776_s11, %s777_s12  }
  0x12   :  { %s778_s15 = smov [#allocation3]   ;;  %s727_s19 = scalar_lea.hbm %s889_s1, 2048 }
  0x13   :  { %s21_s16 = sshll.u32 %s778_s15, 4  ;;  %p728_p8 = scmp.ne.s32.totalorder %s889_s1, %s727_s19  ;;  %s22_s16 = int_to_ptr.vmem [resolvable:$true] %s21_s16 }
  0x14   :  { %p731_p9 = scmp.lt.u32.totalorder %s727_s19, %s889_s1 }
  0x16   :  { %p733_p10 = pnand %p731_p9, %p728_p8 }
  0x18   :  { %736 = shalt.err (!%p733_p10)
}
  0x19   :  { %s737_s24 = scalar_lea.vmem %s22_s16, 2048  ;;  %p742_p12 = scmp.lt.s32.totalorder %s22_s16, %s22_s16 }
  0x1a   :  { %p738_p11 = scmp.ne.s32.totalorder %s22_s16, %s737_s24  ;;  %p743_p13 = scmp.lt.s32.totalorder %s737_s24, %s737_s24 }
  0x1c   :  { %p744_p0 = por %p743_p13, %p742_p12 }
  0x1e   :  { %p745_p1 = pnand %p744_p0, %p738_p11 }
  0x20   :  { %748 = shalt.err (!%p745_p1)
}
  0x21   :  { %s779_s3 = smov 128   ;;  %s780_s25 = smov 8  }
  0x22   :  { %27 = dma.hbm_to_vmem [thread:$0]  %s889_s1, 2048, %s22_s16, [#allocation4], %s779_s3, %s779_s3, %s780_s25  }
  0x23   :  { %s781_s28 = smov [#allocation7]   ;;  %s749_s9 = scalar_lea.hbm %s893_s5, 1024 }
  0x24   :  { %s49_s29 = sshll.u32 %s781_s28, 4  ;;  %p750_p2 = scmp.ne.s32.totalorder %s893_s5, %s749_s9  ;;  %s50_s29 = int_to_ptr.vmem [resolvable:$true] %s49_s29 }
  0x25   :  { %p753_p3 = scmp.lt.u32.totalorder %s749_s9, %s893_s5 }
  0x27   :  { %p755_p4 = pnand %p753_p3, %p750_p2 }
  0x29   :  { %758 = shalt.err (!%p755_p4)
}
  0x2a   :  { %s759_s17 = scalar_lea.vmem %s50_s29, 1024  ;;  %p764_p6 = scmp.lt.s32.totalorder %s50_s29, %s50_s29 }
  0x2b   :  { %p760_p5 = scmp.ne.s32.totalorder %s50_s29, %s759_s17  ;;  %p765_p7 = scmp.lt.s32.totalorder %s759_s17, %s759_s17 }
  0x2d   :  { %p766_p8 = por %p765_p7, %p764_p6 }
  0x2f   :  { %p767_p9 = pnand %p766_p8, %p760_p5 }
  0x31   :  { %770 = shalt.err (!%p767_p9)
}
  0x32   :  { %55 = dma.hbm_to_vmem [thread:$0]  %s893_s5, 1024, %s50_s29, [#allocation6], %s776_s11, %s776_s11, %s777_s12  }
  0x33   :  { %771 = dma.done.wait [#allocation4], 2048  }
  0x34   :  { %772 = vsyncadd [#allocation4], 4294965248 }
  0x35   :  { %773 = dma.done.wait [#allocation6], 3072  }
  0x36   :  { %774 = vsyncadd [#allocation6], 4294964224  ;;  %v782_v0 = vmov 0   ;;  %v657_v1 = vld [vmem:[#allocation3 + $0x4] ss:$8 sps:$4 sm:$0xff]   ;;  %v69_v10 = vld [vmem:[%s888_s0] sm:$0xff]  ;;  %v226_v45 = vlaneseq }
  0x37   :  { %68 = vst [vmem:[#allocation2] sm:$0xf] %v782_v0  ;;  %202 = vmatprep.mubr.bf16.mxu0 %v782_v0  ;;  %v659_v2 = vld [vmem:[#allocation3] ss:$8 sps:$4 sm:$0xff]   ;;  %170 = vmatprep.subr.bf16.mxu0 %v657_v1  ;;  %v660_v3 = vld [vmem:[#allocation3 + $0x14] ss:$8 sps:$4 sm:$0xff]   ;;  %v70_v11 = vpack.c.bf16 %v69_v10, %v69_v10 }
  0x38   :  { %171 = vmatpush1.bf16.msra.mxu0 %v659_v2  ;;  %v662_v4 = vld [vmem:[#allocation3 + $0x10] ss:$8 sps:$4 sm:$0xff]   ;;  %v663_v5 = vld [vmem:[#allocation3 + $0x24] ss:$8 sps:$4 sm:$0xff]   ;;  %v665_v6 = vld [vmem:[#allocation3 + $0x20] ss:$8 sps:$4 sm:$0xff]  }
  0x39   :  { %172 = vmatprep.subr.bf16.mxu0 %v660_v3  ;;  %v666_v7 = vld [vmem:[#allocation3 + $0x34] ss:$8 sps:$4 sm:$0xff]   ;;  %v668_v8 = vld [vmem:[#allocation3 + $0x30] ss:$8 sps:$4 sm:$0xff]   ;;  %v669_v9 = vld [vmem:[#allocation3 + $0x44] ss:$8 sps:$4 sm:$0xff]  }
  0x3a   :  { %vm71_vm0 = vcmask 27648   ;;  %v681_v12 = vld [vmem:[#allocation5 + $0x40] sm:$0xff]   ;;  %v683_v15 = vld [vmem:[#allocation5 + $0x48] sm:$0xff]   ;;  %v685_v17 = vld [vmem:[#allocation5 + $0x50] sm:$0xff]   ;;  %v783_v37 = vmov 0.0   ;;  %v227_v47 = vshrl.u32 %v226_v45, 7 }
  0x3b   :  { %v682_v13 = vld [vmem:[#allocation5] sm:$0xff]   ;;  %72 = vst.msk [vmem:[#allocation2] sm:$0xf] %vm71_vm0, %v70_v11  ;;  %595 = vmatprep.subr.bf16.mxu1 %v681_v12  ;;  %v684_v16 = vld [vmem:[#allocation5 + $0x8] sm:$0xff]   ;;  %v672_v18 = vld [vmem:[#allocation3 + $0x54] ss:$8 sps:$4 sm:$0xff]  }
  0x3c   :  { %173 = vmatpush1.bf16.msra.mxu0 %v662_v4  ;;  %v671_v14 = vld [vmem:[#allocation3 + $0x40] ss:$8 sps:$4 sm:$0xff]   ;;  %596 = vmatpush3.bf16.msra.mxu1 %v682_v13  ;;  %v674_v19 = vld [vmem:[#allocation3 + $0x50] ss:$8 sps:$4 sm:$0xff]   ;;  %v675_v22 = vld [vmem:[#allocation3 + $0x64] ss:$8 sps:$4 sm:$0xff]  }
  0x3d   :  { %174 = vmatprep.subr.bf16.mxu0 %v663_v5  ;;  %597 = vmatprep.subr.bf16.mxu1 %v683_v15  ;;  %v686_v20 = vld [vmem:[#allocation5 + $0x10] sm:$0xff]   ;;  %v687_v21 = vld [vmem:[#allocation5 + $0x58] sm:$0xff]   ;;  %v677_v23 = vld [vmem:[#allocation3 + $0x60] ss:$8 sps:$4 sm:$0xff]   ;;  %v784_v43 = vmov 1966171168  }
  0x3e   :  { %v678_v24 = vld [vmem:[#allocation3 + $0x74] ss:$8 sps:$4 sm:$0xff]   ;;  %v689_v26 = vld [vmem:[#allocation5 + $0x60] sm:$0xff]   ;;  %v680_v28 = vld [vmem:[#allocation3 + $0x70] ss:$8 sps:$4 sm:$0xff]   ;;  %v224_v44 = vunpack.c.l.s4 %v784_v43  ;;  %v242_v54 = vsub.s32 0, %v227_v47 }
  0x3f   :  { %v688_v25 = vld [vmem:[#allocation5 + $0x18] sm:$0xff]   ;;  %v690_v27 = vld [vmem:[#allocation5 + $0x20] sm:$0xff]   ;;  %v691_v29 = vld [vmem:[#allocation5 + $0x68] sm:$0xff]   ;;  %vm785_vm1 = vmmov 0   ;;  %vm545_vm2 = vcmask 15360  }
  0x40   :  { %175 = vmatpush1.bf16.msra.mxu0 %v665_v6  ;;  %598 = vmatpush3.bf16.msra.mxu1 %v684_v16  ;;  %v692_v30 = vld [vmem:[#allocation5 + $0x28] sm:$0xff]   ;;  %v693_v32 = vld [vmem:[#allocation5 + $0x70] sm:$0xff]   ;;  %v695_v34 = vld [vmem:[#allocation5 + $0x78] sm:$0xff]   ;;  %v225_v46 = vunpack.c.0.s8 %v224_v44 }
  0x41   :  { %176 = vmatprep.subr.bf16.mxu0 %v666_v7  ;;  %599 = vmatprep.subr.bf16.mxu1 %v685_v17  ;;  %v694_v33 = vld [vmem:[#allocation5 + $0x30] sm:$0xff]   ;;  %v696_v35 = vld [vmem:[#allocation5 + $0x38] sm:$0xff]   ;;  %v697_v36 = vld [vmem:[#allocation7] sm:$0xff]  }
  0x42   :  { %v73_v31 = vld [vmem:[#allocation2] sm:$0xf]  ;;  %v698_v38 = vld [vmem:[#allocation7 + $0x8] sm:$0xff]   ;;  %v699_v39 = vld [vmem:[#allocation7 + $0x10] sm:$0xff]   ;;  %v228_v49 = vsub.s32 %v225_v46, %v227_v47 }
  0x43   :  { %v700_v40 = vld [vmem:[#allocation7 + $0x18] sm:$0xff]   ;;  %v701_v41 = vld [vmem:[#allocation7 + $0x20] sm:$0xff]   ;;  %v702_v42 = vld [vmem:[#allocation7 + $0x28] sm:$0xff]  }
  0x44   :  { %177 = vmatpush1.bf16.msra.mxu0 %v668_v8  ;;  %600 = vmatpush3.bf16.msra.mxu1 %v686_v20  ;;  %v569_v48 = vld.sshfl [vmem:[%s890_s2] sm:$0x11 pattern:$0x75316420]  ;;  %v703_v5 = vld [vmem:[#allocation7 + $0x30] sm:$0xff]  }
  0x45   :  { %178 = vmatprep.subr.bf16.mxu0 %v669_v9  ;;  %601 = vmatprep.subr.bf16.mxu1 %v687_v21  ;;  %v222_v50 = vcombine.high %v569_v48, %v569_v48  ;;  %v229_v51 = vrot.slane %v569_v48, %v228_v49  ;;  %v704_v6 = vld [vmem:[#allocation7 + $0x38] sm:$0xff]  }
  0x46   :  { %v424_v7 = vld [vmem:[%s892_s4] sm:$0x1] }
  0x47   :  { %v236_v52 = vrot.slane %v222_v50, %v228_v49  ;;  %v238_v53 = vpack.i.b16 %v229_v51, %v229_v51  ;;  %v426_v8 = vpack.i.b16 %v424_v7, %v424_v7 }
  0x48   :  { %179 = vmatpush1.bf16.msra.mxu0 %v671_v14  ;;  %602 = vmatpush3.bf16.msra.mxu1 %v688_v25 }
  0x49   :  { %180 = vmatprep.subr.bf16.mxu0 %v672_v18  ;;  %603 = vmatprep.subr.bf16.mxu1 %v689_v26  ;;  %v245_v55 = vpack.i.b16 %v236_v52, %v236_v52  ;;  %v243_v56 = vrot.slane %v238_v53, %v242_v54  ;;  %v431_v12 = vrot.slane %v426_v8, %v242_v54  ;;  %v586_v18 = vld [vmem:[%s894_s6] ss:$0 sm:$0xff] }
  0x4b   :  { %v250_v58 = vrot.slane %v245_v55, %v242_v54 }
  0x4c   :  { %181 = vmatpush1.bf16.msra.mxu0 %v674_v19  ;;  %604 = vmatpush3.bf16.msra.mxu1 %v690_v27 }
  0x4d   :  { %182 = vmatprep.subr.bf16.mxu0 %v675_v22  ;;  %605 = vmatprep.subr.bf16.mxu1 %v691_v29 }
  0x50   :  { %183 = vmatpush1.bf16.msra.mxu0 %v677_v23  ;;  %606 = vmatpush3.bf16.msra.mxu1 %v692_v30 }
  0x51   :  { %184 = vmatprep.subr.bf16.mxu0 %v678_v24  ;;  %607 = vmatprep.subr.bf16.mxu1 %v693_v32 }
  0x54   :  { %185 = vmatpush1.bf16.msra.mxu0 %v680_v28  ;;  %608 = vmatpush3.bf16.msra.mxu1 %v694_v33 }
  0x55   :  { %609 = vmatprep.subr.bf16.mxu1 %v695_v34  ;;  %626 = vmatprep.subr.bf16.mxu0 %v783_v37 }
  0x57   :  { %203 = vmatmul.mubr.bf16.vlgmr.msra.gmra.mrb[0].mxu0 %v73_v31 }
  0x58   :  { %610 = vmatpush3.bf16.msra.mxu1 %v696_v35  ;;  %627 = vmatpush3.bf16.msra.mxu0 %v697_v36 }
  0x59   :  { %628 = vmatprep.subr.bf16.mxu0 %v783_v37  ;;  %642 = vmatprep.mubr.msk.bf16.mxu0 %vm785_vm1, %v783_v37 }
  0x5c   :  { %629 = vmatpush3.bf16.msra.mxu0 %v698_v38 }
  0x5d   :  { %630 = vmatprep.subr.bf16.mxu0 %v783_v37 }
  0x60   :  { %631 = vmatpush3.bf16.msra.mxu0 %v699_v39 }
  0x61   :  { %632 = vmatprep.subr.bf16.mxu0 %v783_v37 }
  0x64   :  { %633 = vmatpush3.bf16.msra.mxu0 %v700_v40 }
  0x65   :  { %634 = vmatprep.subr.bf16.mxu0 %v783_v37 }
  0x68   :  { %635 = vmatpush3.bf16.msra.mxu0 %v701_v41 }
  0x69   :  { %636 = vmatprep.subr.bf16.mxu0 %v783_v37 }
  0x6c   :  { %637 = vmatpush3.bf16.msra.mxu0 %v702_v42 }
  0x6d   :  { %638 = vmatprep.subr.bf16.mxu0 %v783_v37 }
  0x70   :  { %639 = vmatpush3.bf16.msra.mxu0 %v703_v5 }
  0x71   :  { %640 = vmatprep.subr.bf16.mxu0 %v783_v37 }
  0x74   :  { %641 = vmatpush3.bf16.msra.mxu0 %v704_v6 }
 0x12a   :  { %v204_v57 = vpop.f32.mrb[0].mxu0 }
 0x12b   :  { %v211_v59 = vpack.c.bf16 %v204_v57, %v204_v57  ;;  %v206_v60 = vpop.f32.mrb[1].mxu0 }
 0x12c   :  { %v212_v61 = vpack.c.bf16 %v206_v60, %v206_v60  ;;  %v208_v62 = vpop.f32.mrb[2].mxu0 }
 0x12d   :  { %v251_v63 = vadd.bf16 %v243_v56, %v211_v59  ;;  %v209_v1 = vpop.f32.mrb[3].mxu0 }
 0x12e   :  { %v252_v2 = vadd.bf16 %v250_v58, %v212_v61 }
 0x12f   :  { %v253_v4 = vmax.bf16 %v782_v0, %v251_v63 }
 0x130   :  { %v254_v3 = vmax.bf16 %v782_v0, %v252_v2 }
 0x132   :  { %415 = vmatprep.mubr.bf16.mxu1 %v254_v3 }
 0x133   :  { %416 = vmatmul.mubr.bf16.vlgmr.msra.gmra.mrb[0].mxu1 %v253_v4 }
 0x206   :  { %v611_v9 = vpop.f32.mrb[0].mxu1 }
 0x207   :  { %v612_v10 = vpop.f32.mrb[1].mxu1 }
 0x208   :  { %v613_v11 = vadd.f32 %v612_v10, %v611_v9  ;;  %v614_v13 = vpop.f32.mrb[2].mxu1 }
 0x209   :  { %v615_v14 = vpop.f32.mrb[3].mxu1 }
 0x20a   :  { %v423_v15 = vpack.c.bf16 %v613_v11, %v613_v11 }
 0x20c   :  { %v432_v16 = vadd.bf16 %v431_v12, %v423_v15 }
 0x20e   :  { %v433_v17 = vmax.bf16 %v782_v0, %v432_v16 }
 0x210   :  { %643 = vmatmul.mubr.bf16.vlgmr.msra.gmra.mrb[4].mxu0 %v433_v17 }
 0x2e3   :  { %v539_v19 = vpop.f32.mrb[4].mxu0 }
 0x2e4   :  { %v540_v20 = vadd.f32 %v586_v18, %v539_v19  ;;  %v644_v21 = vpop.f32.mrb[5].mxu0 }
 0x2e5   :  { %v542_v22 = vpop.f32.mrb[6].mxu0 }
 0x2e6   :  { %546 = vst.msk [vmem:[%s895_s7] sm:$0xff] %vm545_vm2, %v540_v20  ;;  %v645_v23 = vpop.f32.mrb[7].mxu0 }
 0x2e7   :  { %551 = vsyncpa [#allocation4], 1 }
 0x2e8   :  { %552 = vsyncpa [#allocation6], 1 }

</bundles_post_ra>
